<compile_context>
chip_gen: v7x
topology: tpu7x:2x2x1
jax: 0.10.0
libtpu: 0.0.40
codegen_flags: <defaults>
</compile_context>

<pallas_src>
import functools

import jax
import jax.numpy as jnp
import numpy as np
from jax.experimental import pallas as pl
from jax.experimental.pallas import tpu as pltpu


# ----------------------------------------------------------------------------
# config (the original repo reads these from a config module)
# ----------------------------------------------------------------------------
class config:
    OHEM = True            # original CTPN repo default
    RPN_TOTAL_NUM = 256    # total (pos + hard-neg) anchors kept by OHEM


_LANES = 128
_DEFAULT_BLOCK_ROWS = 512   # 512 rows x 128 lanes = 65536 anchors per grid step


# ----------------------------------------------------------------------------
# Pallas kernel
# ----------------------------------------------------------------------------
def _rpn_cls_loss_kernel(data_ref, neg_loss_ref, stats_ref):
    # data_ref block: (3, block_rows, 128) -> [p0, p1, labels]
    p0 = data_ref[0]          # (block_rows, 128) class-0 logits
    p1 = data_ref[1]          # (block_rows, 128) class-1 logits
    lab = data_ref[2]         # (block_rows, 128) labels {-1, 0, 1}; pad = -1

    # 2-class cross entropy: logsumexp(p0, p1) - p[label]
    # logsumexp(a, b) = max + log(1 + exp(-|a - b|))  -> one exp + one log.
    m = jnp.maximum(p0, p1)
    lse = m + jnp.log(1.0 + jnp.exp(-jnp.abs(p0 - p1)))
    picked = jnp.where(lab == 1.0, p1, p0)
    loss = lse - picked

    pos = (lab == 1.0).astype(jnp.float32)
    neg = (lab == 0.0).astype(jnp.float32)
    valid = pos + neg
    masked_loss = loss * valid

    # Lane-dense store of negative-anchor losses (-1 for pos / ignore / pad);
    # the wrapper runs the bounded OHEM top-k on this slab.
    neg_loss_ref[...] = jnp.where(lab == 0.0, loss, -1.0)

    # Two-stage reduction: sublane (row) partial sums on the VPU, then a single
    # 128-lane cross-lane reduce per quantity.
    def _reduce(x):
        return jnp.sum(jnp.sum(x, axis=0, keepdims=True))

    # Per-block scalar stats written element-wise to the SMEM output row.
    stats_ref[0, 0] = _reduce(masked_loss * pos)   # sum of positive-anchor losses
    stats_ref[0, 1] = _reduce(pos)                 # number of positive anchors
    stats_ref[0, 2] = _reduce(masked_loss)         # sum of valid-anchor losses
    stats_ref[0, 3] = _reduce(valid)               # number of valid anchors


def _run_kernel(data, rows, block_rows, num_blocks):
    return pl.pallas_call(
        _rpn_cls_loss_kernel,
        out_shape=(
            jax.ShapeDtypeStruct((rows, _LANES), jnp.float32),     # neg losses
            jax.ShapeDtypeStruct((num_blocks, 4), jnp.float32),    # per-block stats
        ),
        grid=(num_blocks,),
        in_specs=[
            pl.BlockSpec((3, block_rows, _LANES), lambda i: (0, i, 0)),
        ],
        out_specs=(
            pl.BlockSpec((block_rows, _LANES), lambda i: (i, 0)),
            pl.BlockSpec((1, 4), lambda i: (i, 0),
                         memory_space=pltpu.MemorySpace.SMEM),
        ),
        compiler_params=pltpu.CompilerParams(
            dimension_semantics=("parallel",)),
    )(data)


# ----------------------------------------------------------------------------
# geometry: pad anchors to a sublane-dense (rows, 128) slab, tiled in row blocks
# ----------------------------------------------------------------------------
def _pad_geometry(n, max_block_rows):
    rows = max(8, (n + _LANES - 1) // _LANES)
    rows = ((rows + 7) // 8) * 8                       # multiple of 8 sublanes
    num_blocks = (rows + max_block_rows - 1) // max_block_rows
    block_rows = (rows + num_blocks - 1) // num_blocks
    block_rows = ((block_rows + 7) // 8) * 8
    rows = num_blocks * block_rows
    return rows, block_rows, num_blocks


# ----------------------------------------------------------------------------
# wrapper reproducing RPN_CLS_Loss.forward
# ----------------------------------------------------------------------------
@functools.partial(jax.jit, static_argnames=("ohem", "max_block_rows"))
def rpn_cls_loss(pred, target, *, ohem=config.OHEM,
                 max_block_rows=_DEFAULT_BLOCK_ROWS):
    """pred: (1, N, 2) float32 logits; target: (1, N) float32 labels {-1,0,1}."""
    n = pred.shape[1]
    rows, block_rows, num_blocks = _pad_geometry(n, max_block_rows)
    npad = rows * _LANES

    # One pad + one transpose + one concat -> single fused (3, rows, 128) input.
    logits = pred[0].astype(jnp.float32)                       # (N, 2)
    labels = target[0].astype(jnp.float32)                     # (N,)
    logits_p = jnp.pad(logits, ((0, npad - n), (0, 0)))        # zero-pad logits
    labels_p = jnp.pad(labels, (0, npad - n), constant_values=-1.0)
    data = jnp.concatenate([logits_p.T, labels_p[None, :]], axis=0)  # (3, npad)
    data = data.reshape(3, rows, _LANES)

    neg_loss, part_stats = _run_kernel(data, rows, block_rows, num_blocks)

    stats = jnp.sum(part_stats, axis=0)                        # (4,)
    sum_pos, n_pos, sum_valid, n_valid = stats[0], stats[1], stats[2], stats[3]

    if ohem:
        n_neg = n_valid - n_pos                                # no 2nd label pass
        k_static = min(config.RPN_TOTAL_NUM, npad)             # bounded top-k
        top_vals, _ = jax.lax.top_k(neg_loss.reshape(-1), k_static)
        # torch.topk would raise if RPN_TOTAL_NUM - num_pos < 0; we clamp k to 0.
        k_dyn = jnp.maximum(
            jnp.minimum(n_neg, jnp.float32(config.RPN_TOTAL_NUM) - n_pos), 0.0)
        idx = jnp.arange(k_static, dtype=jnp.float32)
        topk_sum = jnp.sum(jnp.where(idx < k_dyn, top_vals, 0.0))
        return (sum_pos + topk_sum) / jnp.float32(config.RPN_TOTAL_NUM)
    else:
        mean_valid = sum_valid / jnp.maximum(n_valid, 1.0)
        return jnp.where(n_valid > 0.0, jnp.clip(mean_valid, 0.0, 10.0), 0.0)


# ----------------------------------------------------------------------------
# pure-numpy reference (mirrors the PyTorch code) for a sanity check
# ----------------------------------------------------------------------------
def _reference(pred, target, ohem, rpn_total_num):
    logits = np.asarray(pred[0], dtype=np.float64)     # (N, 2)
    cls_gt = np.asarray(target[0], dtype=np.float64)   # (N,)
    m = np.maximum(logits[:, 0], logits[:, 1])
    lse = m + np.log(np.exp(logits[:, 0] - m) + np.exp(logits[:, 1] - m))
    if ohem:
        pos = cls_gt == 1
        neg = cls_gt == 0
        loss_pos = lse[pos] - logits[pos, 1]
        loss_neg = lse[neg] - logits[neg, 0]
        num_pos = int(pos.sum())
        k = min(int(neg.sum()), rpn_total_num - num_pos)
        k = max(k, 0)   # torch.topk errors on k < 0; both impls clamp to 0
        topk = np.sort(loss_neg)[::-1][:k]
        return (loss_pos.sum() + topk.sum()) / rpn_total_num
    keep = cls_gt != -1
    gt = cls_gt[keep].astype(np.int64)
    lk = logits[keep]
    if gt.size == 0:
        return 0.0
    loss = lse[keep] - lk[np.arange(lk.shape[0]), gt]
    return float(np.clip(loss.mean(), 0.0, 10.0))


def _make_labels(key, n, num_pos, num_neg):
    base = jnp.full((n,), -1.0, jnp.float32)
    base = base.at[:num_pos].set(1.0).at[num_pos:num_pos + num_neg].set(0.0)
    perm = jax.random.permutation(key, n)
    return base[perm][None, :]     # (1, n)


# ----------------------------------------------------------------------------
if __name__ == "__main__":
    key = jax.random.PRNGKey(0)
    k1, k2, k3, k4 = jax.random.split(key, 4)
    R = config.RPN_TOTAL_NUM

    # case 1: small anchor count (not a multiple of 128), single grid step
    n1 = 777
    pred1 = jax.random.normal(k1, (1, n1, 2), dtype=jnp.float32)
    tgt1 = _make_labels(k2, n1, num_pos=20, num_neg=400)
    for ohem in (True, False):
        out = rpn_cls_loss(pred1, tgt1, ohem=ohem, max_block_rows=512)
        jax.block_until_ready(out)
        np.testing.assert_allclose(
            np.asarray(out), _reference(pred1, tgt1, ohem, R),
            rtol=1e-3, atol=1e-5)

    # case 2: small block size to force a 2-step grid (exercises the blocked,
    # pipelined path and the per-block stats reduction)
    n2 = 1500
    pred2 = jax.random.normal(k3, (1, n2, 2), dtype=jnp.float32)
    tgt2 = _make_labels(k4, n2, num_pos=15, num_neg=600)
    for ohem in (True, False):
        out = rpn_cls_loss(pred2, tgt2, ohem=ohem, max_block_rows=8)
        jax.block_until_ready(out)
        np.testing.assert_allclose(
            np.asarray(out), _reference(pred2, tgt2, ohem, R),
            rtol=1e-3, atol=1e-5)

    print("KERNEL_OK")
</pallas_src>

<mosaic_0001>
module attributes {stable_mosaic.version = 11 : i64} {
  func.func @_rpn_cls_loss_kernel(%arg0: i32, %arg1: memref<3x8x128xf32, #tpu.memory_space<vmem>>, %arg2: memref<8x128xf32, #tpu.memory_space<vmem>>, %arg3: memref<1x4xf32, #tpu.memory_space<smem>>) attributes {dimension_semantics = [#tpu.dimension_semantics<parallel>], iteration_bounds = array<i64: 1>, scalar_prefetch = 0 : i64, scratch_operands = 0 : i64, tpu.core_type = #tpu.core_type<tc>, window_params = [{transform_indices = @transform_0, window_bounds = array<i64: 3, 8, 128>}, {transform_indices = @transform_1, window_bounds = array<i64: 8, 128>}, {transform_indices = @transform_2, window_bounds = array<i64: 1, 4>}]} {
    %c0 = arith.constant 0 : index
    %c0_0 = arith.constant 0 : index
    %c0_1 = arith.constant 0 : index
    %0 = vector.load %arg1[%c0, %c0_0, %c0_1] : memref<3x8x128xf32, #tpu.memory_space<vmem>>, vector<1x8x128xf32>
    %1 = vector.shape_cast %0 : vector<1x8x128xf32> to vector<8x128xf32>
    %c1 = arith.constant 1 : index
    %c0_2 = arith.constant 0 : index
    %c0_3 = arith.constant 0 : index
    %2 = vector.load %arg1[%c1, %c0_2, %c0_3] : memref<3x8x128xf32, #tpu.memory_space<vmem>>, vector<1x8x128xf32>
    %3 = vector.shape_cast %2 : vector<1x8x128xf32> to vector<8x128xf32>
    %c2 = arith.constant 2 : index
    %c0_4 = arith.constant 0 : index
    %c0_5 = arith.constant 0 : index
    %4 = vector.load %arg1[%c2, %c0_4, %c0_5] : memref<3x8x128xf32, #tpu.memory_space<vmem>>, vector<1x8x128xf32>
    %5 = vector.shape_cast %4 : vector<1x8x128xf32> to vector<8x128xf32>
    %6 = arith.maximumf %1, %3 : vector<8x128xf32>
    %7 = arith.subf %1, %3 : vector<8x128xf32>
    %8 = math.absf %7 : vector<8x128xf32>
    %cst = arith.constant 0.000000e+00 : f32
    %9 = vector.broadcast %cst : f32 to vector<8x128xf32>
    %10 = arith.subf %9, %8 : vector<8x128xf32>
    %11 = math.exp %10 : vector<8x128xf32>
    %cst_6 = arith.constant 1.000000e+00 : f32
    %12 = vector.broadcast %cst_6 : f32 to vector<8x128xf32>
    %13 = arith.addf %12, %11 : vector<8x128xf32>
    %14 = math.log %13 : vector<8x128xf32>
    %15 = arith.addf %6, %14 : vector<8x128xf32>
    %cst_7 = arith.constant 1.000000e+00 : f32
    %16 = vector.broadcast %cst_7 : f32 to vector<8x128xf32>
    %17 = arith.cmpf oeq, %5, %16 : vector<8x128xf32>
    %18 = arith.select %17, %3, %1 : vector<8x128xi1>, vector<8x128xf32>
    %19 = arith.subf %15, %18 : vector<8x128xf32>
    %cst_8 = arith.constant 1.000000e+00 : f32
    %20 = vector.broadcast %cst_8 : f32 to vector<8x128xf32>
    %21 = arith.cmpf oeq, %5, %20 : vector<8x128xf32>
    %22 = arith.extui %21 : vector<8x128xi1> to vector<8x128xi32>
    %23 = arith.sitofp %22 : vector<8x128xi32> to vector<8x128xf32>
    %cst_9 = arith.constant 0.000000e+00 : f32
    %24 = vector.broadcast %cst_9 : f32 to vector<8x128xf32>
    %25 = arith.cmpf oeq, %5, %24 : vector<8x128xf32>
    %26 = arith.extui %25 : vector<8x128xi1> to vector<8x128xi32>
    %27 = arith.sitofp %26 : vector<8x128xi32> to vector<8x128xf32>
    %28 = arith.addf %23, %27 : vector<8x128xf32>
    %29 = arith.mulf %19, %28 : vector<8x128xf32>
    %cst_10 = arith.constant 0.000000e+00 : f32
    %30 = vector.broadcast %cst_10 : f32 to vector<8x128xf32>
    %31 = arith.cmpf oeq, %5, %30 : vector<8x128xf32>
    %cst_11 = arith.constant -1.000000e+00 : f32
    %32 = vector.broadcast %cst_11 : f32 to vector<8x128xf32>
    %33 = arith.select %31, %19, %32 : vector<8x128xi1>, vector<8x128xf32>
    %c0_12 = arith.constant 0 : index
    %c0_13 = arith.constant 0 : index
    %34 = vector.load %arg2[%c0_12, %c0_13] : memref<8x128xf32, #tpu.memory_space<vmem>>, vector<8x128xf32>
    tpu.vector_store %arg2[%c0_12, %c0_13], %33 {strides = array<i32>} : memref<8x128xf32, #tpu.memory_space<vmem>>, vector<8x128xf32>,
    %35 = arith.mulf %29, %23 : vector<8x128xf32>
    %cst_14 = arith.constant dense<0.000000e+00> : vector<128xf32>
    %36 = vector.multi_reduction <add>, %35, %cst_14 [0] : vector<8x128xf32> to vector<128xf32>
    %37 = vector.shape_cast %36 : vector<128xf32> to vector<1x128xf32>
    %38 = vector.shape_cast %37 : vector<1x128xf32> to vector<1x1x128xf32>
    %cst_15 = arith.constant dense<0.000000e+00> : vector<1xf32>
    %39 = vector.multi_reduction <add>, %38, %cst_15 [1, 2] : vector<1x1x128xf32> to vector<1xf32>
    %40 = vector.shape_cast %39 : vector<1xf32> to vector<1x1x1xf32>
    %41 = vector.extract %40[0, 0, 0] : f32 from vector<1x1x1xf32>
    %c0_16 = arith.constant 0 : index
    %c0_17 = arith.constant 0 : index
    %42 = memref.load %arg3[%c0_16, %c0_17] : memref<1x4xf32, #tpu.memory_space<smem>>
    memref.store %41, %arg3[%c0_16, %c0_17] : memref<1x4xf32, #tpu.memory_space<smem>>
    %cst_18 = arith.constant dense<0.000000e+00> : vector<128xf32>
    %43 = vector.multi_reduction <add>, %23, %cst_18 [0] : vector<8x128xf32> to vector<128xf32>
    %44 = vector.shape_cast %43 : vector<128xf32> to vector<1x128xf32>
    %45 = vector.shape_cast %44 : vector<1x128xf32> to vector<1x1x128xf32>
    %cst_19 = arith.constant dense<0.000000e+00> : vector<1xf32>
    %46 = vector.multi_reduction <add>, %45, %cst_19 [1, 2] : vector<1x1x128xf32> to vector<1xf32>
    %47 = vector.shape_cast %46 : vector<1xf32> to vector<1x1x1xf32>
    %48 = vector.extract %47[0, 0, 0] : f32 from vector<1x1x1xf32>
    %c0_20 = arith.constant 0 : index
    %c1_21 = arith.constant 1 : index
    %49 = memref.load %arg3[%c0_20, %c1_21] : memref<1x4xf32, #tpu.memory_space<smem>>
    memref.store %48, %arg3[%c0_20, %c1_21] : memref<1x4xf32, #tpu.memory_space<smem>>
    %cst_22 = arith.constant dense<0.000000e+00> : vector<128xf32>
    %50 = vector.multi_reduction <add>, %29, %cst_22 [0] : vector<8x128xf32> to vector<128xf32>
    %51 = vector.shape_cast %50 : vector<128xf32> to vector<1x128xf32>
    %52 = vector.shape_cast %51 : vector<1x128xf32> to vector<1x1x128xf32>
    %cst_23 = arith.constant dense<0.000000e+00> : vector<1xf32>
    %53 = vector.multi_reduction <add>, %52, %cst_23 [1, 2] : vector<1x1x128xf32> to vector<1xf32>
    %54 = vector.shape_cast %53 : vector<1xf32> to vector<1x1x1xf32>
    %55 = vector.extract %54[0, 0, 0] : f32 from vector<1x1x1xf32>
    %c0_24 = arith.constant 0 : index
    %c2_25 = arith.constant 2 : index
    %56 = memref.load %arg3[%c0_24, %c2_25] : memref<1x4xf32, #tpu.memory_space<smem>>
    memref.store %55, %arg3[%c0_24, %c2_25] : memref<1x4xf32, #tpu.memory_space<smem>>
    %cst_26 = arith.constant dense<0.000000e+00> : vector<128xf32>
    %57 = vector.multi_reduction <add>, %28, %cst_26 [0] : vector<8x128xf32> to vector<128xf32>
    %58 = vector.shape_cast %57 : vector<128xf32> to vector<1x128xf32>
    %59 = vector.shape_cast %58 : vector<1x128xf32> to vector<1x1x128xf32>
    %cst_27 = arith.constant dense<0.000000e+00> : vector<1xf32>
    %60 = vector.multi_reduction <add>, %59, %cst_27 [1, 2] : vector<1x1x128xf32> to vector<1xf32>
    %61 = vector.shape_cast %60 : vector<1xf32> to vector<1x1x1xf32>
    %62 = vector.extract %61[0, 0, 0] : f32 from vector<1x1x1xf32>
    %c0_28 = arith.constant 0 : index
    %c3 = arith.constant 3 : index
    %63 = memref.load %arg3[%c0_28, %c3] : memref<1x4xf32, #tpu.memory_space<smem>>
    memref.store %62, %arg3[%c0_28, %c3] : memref<1x4xf32, #tpu.memory_space<smem>>
    return
  }
  func.func @transform_0(%arg0: i32) -> (i32, i32, i32) {
    %c0_i32 = arith.constant 0 : i32
    %c0_i32_0 = arith.constant 0 : i32
    %c0_i32_1 = arith.constant 0 : i32
    return %c0_i32, %arg0, %c0_i32_0 : i32, i32, i32
  }
  func.func @transform_1(%arg0: i32) -> (i32, i32) {
    %c0_i32 = arith.constant 0 : i32
    %c0_i32_0 = arith.constant 0 : i32
    return %arg0, %c0_i32 : i32, i32
  }
  func.func @transform_2(%arg0: i32) -> (i32, i32) {
    %c0_i32 = arith.constant 0 : i32
    %c0_i32_0 = arith.constant 0 : i32
    return %arg0, %c0_i32 : i32, i32
  }
}

</mosaic_0001>

<bundles_post_ra>
// kernel: rpn_cls_loss.1
= control target key start
LH: loop header
LB: loop body
LE: loop exit
PB: predicated region body
PF: predicated region fallthrough
CT: control target
= control target key end

     0   :  { %s197_s0 = inlined_call_operand.vmem [shape: f32[3,8,128], index: 0, kind: input, shape index: {}]   ;;  %s198_s1 = inlined_call_operand.vmem [shape: f32[8,128], index: 1, kind: output, shape index: {0}]   ;;  %s199_s2 = inlined_call_operand.vmem [shape: f32[1,4], index: 2, kind: output, shape index: {1}]  }
   0x1   :  { %v11_v0 = vld [vmem:[%s197_s0] sm:$0xff]  ;;  %v131_v1 = vld [vmem:[%s197_s0 + $0x8] sm:$0xff] }
   0x2   :  { %v17_v2 = vsub.f32 %v11_v0, %v131_v1 }
   0x3   :  { %8 = vsyncpa [#allocation3], 0  ;;  %v132_v7 = vld [vmem:[%s197_s0 + $0x10] sm:$0xff]  ;;  %v163_v9 = vmov 0.0   ;;  %v16_v13 = vmax.f32 %v11_v0, %v131_v1  ;;  %vm45_vm2 = vcmask 1040384   ;;  %s120_s18 = sshll.u32 %s199_s2, 4  ;;  %s121_s18 = int_to_ptr.vmem [resolvable:$true] %s120_s18 }
   0x4   :  { %v18_v3 = vand.u32 2147483647, %v17_v2  ;;  %vm26_vm0 = vcmp.eq.f32.partialorder %v132_v7, 1.0  ;;  %vm31_vm1 = vcmp.eq.f32.partialorder %v132_v7, 0.0  ;;  %s149_s22 = scalar_lea.vmem %s121_s18, 16  ;;  %p154_p1 = scmp.lt.s32.totalorder %s121_s18, %s121_s18 }
   0x5   :  { %v133_v10 = vsel %vm26_vm0, 1.0, %v163_v9  ;;  %v134_v11 = vsel %vm31_vm1, 1.0, %v163_v9  ;;  %v27_v18 = vsel %vm26_vm0, %v131_v1, %v11_v0  ;;  %p150_p0 = scmp.ne.s32.totalorder %s121_s18, %s149_s22  ;;  %p155_p2 = scmp.lt.s32.totalorder %s149_s22, %s149_s22 }
   0x6   :  { %v19_v4 = vsub.f32 0.0, %v18_v3  ;;  %v34_v12 = vadd.f32 %v134_v11, %v133_v10  ;;  %v58_v17 = vrot.slane %v133_v10, 4 }
   0x7   :  { %p156_p3 = por %p155_p2, %p154_p1 }
   0x8   :  { %v20_v5 = vmul.f32 1.442695, %v19_v4  ;;  %v94_v14 = vrot.slane %v34_v12, 4  ;;  %v59_v22 = vadd.f32 %v133_v10, %v58_v17 }
   0x9   :  { %p157_p4 = pnand %p156_p3, %p150_p0 }
   0xa   :  { %145 = vpow2.f32 %v20_v5  ;;  %v95_v20 = vadd.f32 %v94_v14, %v34_v12  ;;  %v60_v28 = vrot.slane %v59_v22, 2 }
   0xc   :  { %v96_v25 = vrot.slane %v95_v20, 2  ;;  %v61_v34 = vadd.f32 %v60_v28, %v59_v22 }
   0xe   :  { %v97_v31 = vadd.f32 %v96_v25, %v95_v20  ;;  %v62_v40 = vrot.slane %v61_v34, 1 }
  0x10   :  { %v98_v37 = vrot.slane %v97_v31, 1  ;;  %v63_v46 = vadd.f32 %v62_v40, %v61_v34 }
  0x12   :  { %v99_v43 = vadd.f32 %v98_v37, %v97_v31  ;;  %v64_v49 = vsel %vm45_vm2, %v63_v46, 0.0 }
  0x14   :  { %v146_v6 = vpop.eup %145  ;;  %v100_v48 = vsel %vm45_vm2, %v99_v43, 0.0 }
  0x15   :  { %v22_v8 = vadd.f32 1.0, %v146_v6 }
  0x17   :  { %147 = vlog2.f32 %v22_v8 }
  0x21   :  { %v148_v15 = vpop.eup %147 }
  0x22   :  { %v24_v16 = vmul.f32 0.6931472, %v148_v15 }
  0x24   :  { %v25_v19 = vadd.f32 %v24_v16, %v16_v13 }
  0x26   :  { %v28_v21 = vsub.f32 %v25_v19, %v27_v18 }
  0x28   :  { %v35_v23 = vmul.f32 %v34_v12, %v28_v21  ;;  %v36_v24 = vsel %vm31_vm1, %v28_v21, -1.0 }
  0x29   :  { %37 = vst [vmem:[%s198_s1] sm:$0xff] %v36_v24 }
  0x2a   :  { %v76_v26 = vrot.slane %v35_v23, 4  ;;  %v38_v27 = vmul.f32 %v133_v10, %v35_v23 }
  0x2c   :  { %v77_v29 = vadd.f32 %v76_v26, %v35_v23  ;;  %v39_v30 = vrot.slane %v38_v27, 4 }
  0x2e   :  { %v78_v32 = vrot.slane %v77_v29, 2  ;;  %v40_v33 = vadd.f32 %v39_v30, %v38_v27 }
  0x30   :  { %v79_v35 = vadd.f32 %v78_v32, %v77_v29  ;;  %v41_v36 = vrot.slane %v40_v33, 2 }
  0x32   :  { %v80_v38 = vrot.slane %v79_v35, 1  ;;  %v42_v39 = vadd.f32 %v41_v36, %v40_v33 }
  0x34   :  { %v81_v41 = vadd.f32 %v80_v38, %v79_v35  ;;  %v43_v42 = vrot.slane %v42_v39, 1 }
  0x36   :  { %v82_v44 = vsel %vm45_vm2, %v81_v41, 0.0  ;;  %v44_v45 = vadd.f32 %v43_v42, %v42_v39 }
  0x37   :  { %83 = vadd.xlane.f32.xlu1 %v82_v44 }
  0x38   :  { %v46_v47 = vsel %vm45_vm2, %v44_v45, 0.0 }
  0x39   :  { %47 = vadd.xlane.f32.xlu0 %v46_v47 }
  0x3b   :  { %101 = vadd.xlane.f32.xlu1 %v100_v48 }
  0x3d   :  { %65 = vadd.xlane.f32.xlu0 %v64_v49 }
  0xc4   :  { %v84_v50 = vpop.xlane.xlu1 %83 }
  0xc5   :  { %v85_v51 = vrot.slane %v84_v50, 4 }
  0xc6   :  { %v48_v52 = vpop.xlane.xlu0 %47 }
  0xc7   :  { %v86_v53 = vadd.f32 %v85_v51, %v84_v50  ;;  %v49_v54 = vrot.slane %v48_v52, 4 }
  0xc8   :  { %v102_v55 = vpop.xlane.xlu1 %101 }
  0xc9   :  { %v50_v56 = vadd.f32 %v49_v54, %v48_v52  ;;  %v103_v57 = vrot.slane %v102_v55, 4  ;;  %v87_v58 = vrot.slane %v86_v53, 2 }
  0xca   :  { %v66_v59 = vpop.xlane.xlu0 %65 }
  0xcb   :  { %v51_v60 = vrot.slane %v50_v56, 2  ;;  %v104_v61 = vadd.f32 %v103_v57, %v102_v55  ;;  %v67_v62 = vrot.slane %v66_v59, 4  ;;  %v88_v2 = vadd.f32 %v87_v58, %v86_v53 }
  0xcd   :  { %v105_v63 = vrot.slane %v104_v61, 2  ;;  %v68_v0 = vadd.f32 %v67_v62, %v66_v59  ;;  %v52_v1 = vadd.f32 %v51_v60, %v50_v56  ;;  %v89_v8 = vrot.slane %v88_v2, 1 }
  0xcf   :  { %v106_v3 = vadd.f32 %v105_v63, %v104_v61  ;;  %v69_v4 = vrot.slane %v68_v0, 2  ;;  %v53_v5 = vrot.slane %v52_v1, 1  ;;  %v90_v12 = vadd.f32 %v89_v8, %v88_v2 }
  0xd1   :  { %v70_v6 = vadd.f32 %v69_v4, %v68_v0  ;;  %v54_v7 = vadd.f32 %v53_v5, %v52_v1  ;;  %v107_v10 = vrot.slane %v106_v3, 1 }
  0xd3   :  { %135 = vpush %v54_v7  ;;  %v71_v9 = vrot.slane %v70_v6, 1  ;;  %v108_v13 = vadd.f32 %v107_v10, %v106_v3 }
  0xd5   :  { %v72_v11 = vadd.f32 %v71_v9, %v70_v6 }
  0xd7   :  { %137 = vpush %v72_v11 }
  0xd8   :  { %139 = vpush %v90_v12 }
  0xd9   :  { %141 = vpush %v108_v13 }
 0x104   :  { %s136_s1 = spop %135 }
 0x105   :  { %57 = sst [smem:[#allocation2]] %s136_s1 }
 0x108   :  { %s138_s19 = spop %137 }
 0x109   :  { %75 = sst [smem:[#allocation2 + $0x1]] %s138_s19  ;;  %s140_s20 = spop %139 }
 0x10a   :  { %93 = sst [smem:[#allocation2 + $0x2]] %s140_s20  ;;  %s142_s21 = spop %141 }
 0x10b   :  { %111 = sst [smem:[#allocation2 + $0x3]] %s142_s21 }
 0x10c   :  { %160 = shalt.err (!%p157_p4)
}
 0x10d   :  { %s164_s23 = smov [#allocation2]  }
 0x10e   :  { %123 = dma.smem_to_vmem %s164_s23, 16, %s121_s18, [#allocation3]  }
 0x10f   :  { %161 = dma.done.wait [#allocation3], 16  }
 0x110   :  { %162 = vsyncadd [#allocation3], 4294967280 }
 0x111   :  { %129 = sfence }
 0x112   :  { %130 = vsyncpa [#allocation3], 1 }

</bundles_post_ra>
